<compile_context>
chip_gen: v7x
topology: tpu7x:2x2x1
jax: 0.10.0
libtpu: 0.0.40
codegen_flags: <defaults>
</compile_context>

<pallas_src>
import jax
import jax.numpy as jnp
from jax.experimental import pallas as pl
from jax.experimental.pallas import tpu as pltpu


# ---------------------------------------------------------------------------
# Kernel
# ---------------------------------------------------------------------------
def _awap_kernel(x_ref, w1t_ref, b1_ref, w2t_ref, b2_ref, out_ref):
    # x_ref:   (TM, Lp)  bf16 tile of flattened batch*channel rows (streamed)
    # w1t_ref: (Lp, Hp)  bf16 Linear1 weight, pre-transposed (W1^T), resident
    # b1_ref:  (1, Hp)   f32
    # w2t_ref: (Hp, Lp)  bf16 Linear2 weight, pre-transposed (W2^T), resident
    # b2_ref:  (1, Lp)   f32  (padded lanes, if any, hold a huge negative)
    # out_ref: (TM, 1)   f32
    x_bf = x_ref[...]                          # bf16, straight to the MXU
    x_f32 = x_bf.astype(jnp.float32)           # single upcast, reused below

    # Linear 1 (bf16 MXU operands, f32 accumulation) + bias + ReLU in f32.
    h1 = jnp.dot(x_bf, w1t_ref[...],
                 preferred_element_type=jnp.float32) + b1_ref[...]
    h1 = jnp.maximum(h1, 0.0)

    # Linear 2 (bf16 MXU operands, f32 accumulation) + bias in f32.
    h2 = jnp.dot(h1.astype(jnp.bfloat16), w2t_ref[...],
                 preferred_element_type=jnp.float32) + b2_ref[...]

    # Softmax over the temporal (lane) axis fused with the weighted average:
    #   out = sum(x * e) / sum(e)   — no explicit `wap` tensor is formed.
    m = jnp.max(h2, axis=-1, keepdims=True)
    e = jnp.exp(h2 - m)
    den = jnp.sum(e, axis=-1, keepdims=True)          # (TM, 1)
    num = jnp.sum(x_f32 * e, axis=-1, keepdims=True)  # (TM, 1)
    out_ref[...] = (num * pl.reciprocal(den, approx=True)).astype(out_ref.dtype)


# ---------------------------------------------------------------------------
# Sizing helpers (generation aware)
# ---------------------------------------------------------------------------
def _vmem_limit_bytes():
    """75% of per-core VMEM: ~48 MiB on v7x (64 MiB/TC), ~96 MiB on v5e/v6e."""
    try:
        cap = pltpu.get_tpu_info().vmem_capacity_bytes
    except Exception:
        cap = 64 * 1024 * 1024  # conservative fallback (v7x per-TC)
    return (int(cap) * 3) // 4


def _pad_len(L):
    """Pad L up to a multiple of 128 only when it is already >= 128."""
    if L >= 128 and L % 128 != 0:
        return ((L + 127) // 128) * 128
    return L


def _choose_tm(M, L_pad, vmem_limit, n_x_buffers=2):
    """Row-tile size: multiple of 8 (128 when large), sized so the streamed x
    tiles plus all intermediates and the resident weights fit the per-chip
    VMEM budget. No artificial upper cap -> MiB-scale tiles for good HBM BW."""
    H_pad = 2 * L_pad
    # Resident params (single-buffered): two bf16 weights + two f32 biases.
    resident = 2 * (L_pad * H_pad) * 2 + (H_pad + L_pad) * 4
    # Per-row working set (bytes): streamed bf16 x tiles, f32 upcast of x,
    # f32 + bf16 h1, f32 h2, e / x*e temporaries, double-buffered f32 out.
    per_row = (n_x_buffers * 2 * L_pad   # bf16 x tiles (pipelined)
               + 4 * L_pad               # x upcast to f32
               + 4 * H_pad + 2 * H_pad   # h1 f32 + bf16 cast
               + 4 * L_pad               # h2 f32
               + 8 * L_pad               # e and x*e temporaries
               + 2 * 4)                  # out f32 (2 buffers)
    budget = vmem_limit - resident - (2 << 20)  # 2 MiB slack for the compiler
    if budget <= 0:
        budget = 4 << 20
    tm = max(8, budget // per_row)
    if tm >= 128:
        tm = (tm // 128) * 128
    else:
        tm = (tm // 8) * 8
    m_pad8 = ((M + 7) // 8) * 8
    return max(8, min(tm, m_pad8))


# ---------------------------------------------------------------------------
# One-time parameter prep (hoisted out of the per-call path)
# ---------------------------------------------------------------------------
def prepare_params(w1, b1, w2, b2):
    """Pre-transpose weights, cast to bf16 for the MXU, reshape biases, and
    (only when seq_len >= 128) zero-pad the lane dims to multiples of 128.
    Padded b2 lanes get a huge negative so softmax ignores them."""
    L = w1.shape[1]
    H = w1.shape[0]            # 2*L
    Lp = _pad_len(L)
    Hp = 2 * Lp

    w1t = jnp.asarray(w1, jnp.float32).T       # (L, H)
    w2t = jnp.asarray(w2, jnp.float32).T       # (H, L)
    b1r = jnp.asarray(b1, jnp.float32)
    b2r = jnp.asarray(b2, jnp.float32)

    if Lp != L:
        w1t = jnp.pad(w1t, ((0, Lp - L), (0, Hp - H)))
        w2t = jnp.pad(w2t, ((0, Hp - H), (0, Lp - L)))
        b1r = jnp.pad(b1r, (0, Hp - H))
        b2r = jnp.pad(b2r, (0, Lp - L), constant_values=-1e30)

    return (w1t.astype(jnp.bfloat16),
            b1r.reshape(1, -1),
            w2t.astype(jnp.bfloat16),
            b2r.reshape(1, -1))


# ---------------------------------------------------------------------------
# pallas_call wrapper
# ---------------------------------------------------------------------------
def _make_call(tm, m_pad, Lp, out_dtype, vmem_limit, single_buffer_params):
    Hp = 2 * Lp
    const_kw = ({"pipeline_mode": pl.Buffered(1)}
                if single_buffer_params else {})
    return pl.pallas_call(
        _awap_kernel,
        out_shape=jax.ShapeDtypeStruct((m_pad, 1), out_dtype),
        grid=(m_pad // tm,),
        in_specs=[
            pl.BlockSpec((tm, Lp), lambda i: (i, 0)),            # x (streamed)
            pl.BlockSpec((Lp, Hp), lambda i: (0, 0), **const_kw),  # W1^T
            pl.BlockSpec((1, Hp), lambda i: (0, 0), **const_kw),   # b1
            pl.BlockSpec((Hp, Lp), lambda i: (0, 0), **const_kw),  # W2^T
            pl.BlockSpec((1, Lp), lambda i: (0, 0), **const_kw),   # b2
        ],
        out_specs=pl.BlockSpec((tm, 1), lambda i: (i, 0)),
        compiler_params=pltpu.CompilerParams(
            # Single parallel M axis -> megacore split on v7x (no-op v5e/v6e).
            dimension_semantics=("parallel",),
            vmem_limit_bytes=int(vmem_limit),
        ),
    )


def adaptive_weighted_avg_pool1d(x, w1t, b1r, w2t, b2r, tm=None):
    """x: (B, C, L) float32; params as returned by prepare_params.
    Returns (B, C) — weighted average over the temporal axis."""
    B, C, L = x.shape
    M = B * C
    Lp = w1t.shape[0]                      # possibly 128-aligned seq_len

    vmem_limit = _vmem_limit_bytes()
    if tm is None:
        tm = _choose_tm(M, Lp, vmem_limit)
    m_pad = pl.cdiv(M, tm) * tm

    x2 = x.reshape(M, L)
    if Lp != L:
        x2 = jnp.pad(x2, ((0, 0), (0, Lp - L)))   # zero lanes: no softmax mass
    x2 = x2.astype(jnp.bfloat16)                  # halve the HBM x stream
    if m_pad != M:
        x2 = jnp.pad(x2, ((0, m_pad - M), (0, 0)))  # padded rows sliced off

    try:
        out = _make_call(tm, m_pad, Lp, x.dtype, vmem_limit, True)(
            x2, w1t, b1r, w2t, b2r)
    except Exception:
        # Fallback if this JAX build rejects pipeline_mode=pl.Buffered(1).
        out = _make_call(tm, m_pad, Lp, x.dtype, vmem_limit, False)(
            x2, w1t, b1r, w2t, b2r)

    return out[:M, 0].reshape(B, C)


# ---------------------------------------------------------------------------
# Pure-JAX reference
# ---------------------------------------------------------------------------
def _reference(x, w1, b1, w2, b2):
    h1 = jax.nn.relu(jnp.einsum("bcl,ol->bco", x, w1) + b1)
    h2 = jnp.einsum("bco,lo->bcl", h1, w2) + b2
    wap = jax.nn.softmax(h2, axis=-1)
    return jnp.sum(x * wap, axis=-1)


if __name__ == "__main__":
    B, C, L = 2, 4, 16  # batch, n_in (channels), seq_len

    key = jax.random.PRNGKey(0)
    kx, k1, k2, k3, k4 = jax.random.split(key, 5)

    x = jax.random.normal(kx, (B, C, L), dtype=jnp.float32)
    # Linear(seq_len, 2*seq_len): weight (2L, L), bias (2L,)
    w1 = 0.1 * jax.random.normal(k1, (2 * L, L), dtype=jnp.float32)
    b1 = 0.1 * jax.random.normal(k2, (2 * L,), dtype=jnp.float32)
    # Linear(2*seq_len, seq_len): weight (L, 2L), bias (L,)
    w2 = 0.1 * jax.random.normal(k3, (L, 2 * L), dtype=jnp.float32)
    b2 = 0.1 * jax.random.normal(k4, (L,), dtype=jnp.float32)

    params = prepare_params(w1, b1, w2, b2)   # one-time, hoisted out of hot path
    out = adaptive_weighted_avg_pool1d(x, *params)
    jax.block_until_ready(out)

    ref = _reference(x, w1, b1, w2, b2)
    assert out.shape == (B, C), out.shape
    # bf16 x stream + bf16 MXU operands + approx reciprocal -> loose tolerance.
    assert jnp.allclose(out, ref, atol=3e-2, rtol=3e-2), (out, ref)
    print("KERNEL_OK")
</pallas_src>

<mosaic_0001>
module attributes {stable_mosaic.version = 11 : i64} {
  func.func @_awap_kernel(%arg0: i32, %arg1: memref<8x16xbf16, #tpu.memory_space<vmem>>, %arg2: memref<16x32xbf16, #tpu.memory_space<vmem>>, %arg3: memref<1x32xf32, #tpu.memory_space<vmem>>, %arg4: memref<32x16xbf16, #tpu.memory_space<vmem>>, %arg5: memref<1x16xf32, #tpu.memory_space<vmem>>, %arg6: memref<8x1xf32, #tpu.memory_space<vmem>>) attributes {dimension_semantics = [#tpu.dimension_semantics<parallel>], iteration_bounds = array<i64: 1>, scalar_prefetch = 0 : i64, scratch_operands = 0 : i64, tpu.core_type = #tpu.core_type<tc>, window_params = [{transform_indices = @transform_0, window_bounds = array<i64: 8, 16>}, {pipeline_mode = #tpu.pipeline_mode<synchronous>, transform_indices = @transform_1, window_bounds = array<i64: 16, 32>}, {pipeline_mode = #tpu.pipeline_mode<synchronous>, transform_indices = @transform_2, window_bounds = array<i64: 1, 32>}, {pipeline_mode = #tpu.pipeline_mode<synchronous>, transform_indices = @transform_3, window_bounds = array<i64: 32, 16>}, {pipeline_mode = #tpu.pipeline_mode<synchronous>, transform_indices = @transform_4, window_bounds = array<i64: 1, 16>}, {transform_indices = @transform_5, window_bounds = array<i64: 8, 1>}]} {
    %c0 = arith.constant 0 : index
    %c0_0 = arith.constant 0 : index
    %0 = vector.load %arg1[%c0, %c0_0] : memref<8x16xbf16, #tpu.memory_space<vmem>>, vector<8x16xbf16>
    %1 = arith.extf %0 : vector<8x16xbf16> to vector<8x16xf32>
    %c0_1 = arith.constant 0 : index
    %c0_2 = arith.constant 0 : index
    %2 = vector.load %arg2[%c0_1, %c0_2] : memref<16x32xbf16, #tpu.memory_space<vmem>>, vector<16x32xbf16>
    %cst = arith.constant dense<0.000000e+00> : vector<8x32xf32>
    %3 = tpu.matmul %0, %2, %cst {dimension_numbers = #tpu.dot_dimension_numbers<[1], [0], [0], [1], [0, 0, 1, 1], [], []>} : vector<8x16xbf16>, vector<16x32xbf16>, vector<8x32xf32> -> vector<8x32xf32>
    %c0_3 = arith.constant 0 : index
    %c0_4 = arith.constant 0 : index
    %4 = vector.load %arg3[%c0_3, %c0_4] : memref<1x32xf32, #tpu.memory_space<vmem>>, vector<1x32xf32>
    %5 = vector.broadcast %4 : vector<1x32xf32> to vector<8x32xf32>
    %6 = arith.addf %3, %5 : vector<8x32xf32>
    %cst_5 = arith.constant 0.000000e+00 : f32
    %7 = vector.broadcast %cst_5 : f32 to vector<8x32xf32>
    %8 = arith.maximumf %6, %7 : vector<8x32xf32>
    %9 = arith.truncf %8 : vector<8x32xf32> to vector<8x32xbf16>
    %c0_6 = arith.constant 0 : index
    %c0_7 = arith.constant 0 : index
    %10 = vector.load %arg4[%c0_6, %c0_7] : memref<32x16xbf16, #tpu.memory_space<vmem>>, vector<32x16xbf16>
    %cst_8 = arith.constant dense<0.000000e+00> : vector<8x16xf32>
    %11 = tpu.matmul %9, %10, %cst_8 {dimension_numbers = #tpu.dot_dimension_numbers<[1], [0], [0], [1], [0, 0, 1, 1], [], []>} : vector<8x32xbf16>, vector<32x16xbf16>, vector<8x16xf32> -> vector<8x16xf32>
    %c0_9 = arith.constant 0 : index
    %c0_10 = arith.constant 0 : index
    %12 = vector.load %arg5[%c0_9, %c0_10] : memref<1x16xf32, #tpu.memory_space<vmem>>, vector<1x16xf32>
    %13 = vector.broadcast %12 : vector<1x16xf32> to vector<8x16xf32>
    %14 = arith.addf %11, %13 : vector<8x16xf32>
    %cst_11 = arith.constant dense<0xFF800000> : vector<8xf32>
    %15 = vector.multi_reduction <maximumf>, %14, %cst_11 [1] : vector<8x16xf32> to vector<8xf32>
    %16 = vector.shape_cast %15 : vector<8xf32> to vector<8x1xf32>
    %17 = vector.broadcast %16 : vector<8x1xf32> to vector<8x16xf32>
    %18 = arith.subf %14, %17 : vector<8x16xf32>
    %19 = math.exp %18 : vector<8x16xf32>
    %cst_12 = arith.constant dense<0.000000e+00> : vector<8xf32>
    %20 = vector.multi_reduction <add>, %19, %cst_12 [1] : vector<8x16xf32> to vector<8xf32>
    %21 = vector.shape_cast %20 : vector<8xf32> to vector<8x1xf32>
    %22 = arith.mulf %1, %19 : vector<8x16xf32>
    %cst_13 = arith.constant dense<0.000000e+00> : vector<8xf32>
    %23 = vector.multi_reduction <add>, %22, %cst_13 [1] : vector<8x16xf32> to vector<8xf32>
    %24 = vector.shape_cast %23 : vector<8xf32> to vector<8x1xf32>
    %25 = tpu.reciprocal %21 {approx = true} : vector<8x1xf32> -> vector<8x1xf32>
    %26 = arith.mulf %24, %25 : vector<8x1xf32>
    %c0_14 = arith.constant 0 : index
    %c0_15 = arith.constant 0 : index
    %27 = vector.load %arg6[%c0_14, %c0_15] : memref<8x1xf32, #tpu.memory_space<vmem>>, vector<8x1xf32>
    tpu.vector_store %arg6[%c0_14, %c0_15], %26 {strides = array<i32>} : memref<8x1xf32, #tpu.memory_space<vmem>>, vector<8x1xf32>,
    return
  }
  func.func @transform_0(%arg0: i32) -> (i32, i32) {
    %c0_i32 = arith.constant 0 : i32
    %c0_i32_0 = arith.constant 0 : i32
    return %arg0, %c0_i32 : i32, i32
  }
  func.func @transform_1(%arg0: i32) -> (i32, i32) {
    %c0_i32 = arith.constant 0 : i32
    %c0_i32_0 = arith.constant 0 : i32
    %c0_i32_1 = arith.constant 0 : i32
    return %c0_i32, %c0_i32_0 : i32, i32
  }
  func.func @transform_2(%arg0: i32) -> (i32, i32) {
    %c0_i32 = arith.constant 0 : i32
    %c0_i32_0 = arith.constant 0 : i32
    %c0_i32_1 = arith.constant 0 : i32
    return %c0_i32, %c0_i32_0 : i32, i32
  }
  func.func @transform_3(%arg0: i32) -> (i32, i32) {
    %c0_i32 = arith.constant 0 : i32
    %c0_i32_0 = arith.constant 0 : i32
    %c0_i32_1 = arith.constant 0 : i32
    return %c0_i32, %c0_i32_0 : i32, i32
  }
  func.func @transform_4(%arg0: i32) -> (i32, i32) {
    %c0_i32 = arith.constant 0 : i32
    %c0_i32_0 = arith.constant 0 : i32
    %c0_i32_1 = arith.constant 0 : i32
    return %c0_i32, %c0_i32_0 : i32, i32
  }
  func.func @transform_5(%arg0: i32) -> (i32, i32) {
    %c0_i32 = arith.constant 0 : i32
    %c0_i32_0 = arith.constant 0 : i32
    return %arg0, %c0_i32 : i32, i32
  }
}

module attributes {stable_mosaic.version = 11 : i64} {
  func.func @_awap_kernel(%arg0: i32, %arg1: memref<8x16xbf16, #tpu.memory_space<vmem>>, %arg2: memref<16x32xbf16, #tpu.memory_space<vmem>>, %arg3: memref<1x32xf32, #tpu.memory_space<vmem>>, %arg4: memref<32x16xbf16, #tpu.memory_space<vmem>>, %arg5: memref<1x16xf32, #tpu.memory_space<vmem>>, %arg6: memref<8x1xf32, #tpu.memory_space<vmem>>) attributes {dimension_semantics = [#tpu.dimension_semantics<parallel>], iteration_bounds = array<i64: 1>, scalar_prefetch = 0 : i64, scratch_operands = 0 : i64, tpu.core_type = #tpu.core_type<tc>, window_params = [{transform_indices = @transform_0, window_bounds = array<i64: 8, 16>}, {pipeline_mode = #tpu.pipeline_mode<synchronous>, transform_indices = @transform_1, window_bounds = array<i64: 16, 32>}, {pipeline_mode = #tpu.pipeline_mode<synchronous>, transform_indices = @transform_2, window_bounds = array<i64: 1, 32>}, {pipeline_mode = #tpu.pipeline_mode<synchronous>, transform_indices = @transform_3, window_bounds = array<i64: 32, 16>}, {pipeline_mode = #tpu.pipeline_mode<synchronous>, transform_indices = @transform_4, window_bounds = array<i64: 1, 16>}, {transform_indices = @transform_5, window_bounds = array<i64: 8, 1>}]} {
    %c0 = arith.constant 0 : index
    %c0_0 = arith.constant 0 : index
    %0 = vector.load %arg1[%c0, %c0_0] : memref<8x16xbf16, #tpu.memory_space<vmem>>, vector<8x16xbf16>
    %1 = arith.extf %0 : vector<8x16xbf16> to vector<8x16xf32>
    %c0_1 = arith.constant 0 : index
    %c0_2 = arith.constant 0 : index
    %2 = vector.load %arg2[%c0_1, %c0_2] : memref<16x32xbf16, #tpu.memory_space<vmem>>, vector<16x32xbf16>
    %cst = arith.constant dense<0.000000e+00> : vector<8x32xf32>
    %3 = tpu.matmul %0, %2, %cst {dimension_numbers = #tpu.dot_dimension_numbers<[1], [0], [0], [1], [0, 0, 1, 1], [], []>} : vector<8x16xbf16>, vector<16x32xbf16>, vector<8x32xf32> -> vector<8x32xf32>
    %c0_3 = arith.constant 0 : index
    %c0_4 = arith.constant 0 : index
    %4 = vector.load %arg3[%c0_3, %c0_4] : memref<1x32xf32, #tpu.memory_space<vmem>>, vector<1x32xf32>
    %5 = vector.broadcast %4 : vector<1x32xf32> to vector<8x32xf32>
    %6 = arith.addf %3, %5 : vector<8x32xf32>
    %cst_5 = arith.constant 0.000000e+00 : f32
    %7 = vector.broadcast %cst_5 : f32 to vector<8x32xf32>
    %8 = arith.maximumf %6, %7 : vector<8x32xf32>
    %9 = arith.truncf %8 : vector<8x32xf32> to vector<8x32xbf16>
    %c0_6 = arith.constant 0 : index
    %c0_7 = arith.constant 0 : index
    %10 = vector.load %arg4[%c0_6, %c0_7] : memref<32x16xbf16, #tpu.memory_space<vmem>>, vector<32x16xbf16>
    %cst_8 = arith.constant dense<0.000000e+00> : vector<8x16xf32>
    %11 = tpu.matmul %9, %10, %cst_8 {dimension_numbers = #tpu.dot_dimension_numbers<[1], [0], [0], [1], [0, 0, 1, 1], [], []>} : vector<8x32xbf16>, vector<32x16xbf16>, vector<8x16xf32> -> vector<8x16xf32>
    %c0_9 = arith.constant 0 : index
    %c0_10 = arith.constant 0 : index
    %12 = vector.load %arg5[%c0_9, %c0_10] : memref<1x16xf32, #tpu.memory_space<vmem>>, vector<1x16xf32>
    %13 = vector.broadcast %12 : vector<1x16xf32> to vector<8x16xf32>
    %14 = arith.addf %11, %13 : vector<8x16xf32>
    %cst_11 = arith.constant dense<0xFF800000> : vector<8xf32>
    %15 = vector.multi_reduction <maximumf>, %14, %cst_11 [1] : vector<8x16xf32> to vector<8xf32>
    %16 = vector.shape_cast %15 : vector<8xf32> to vector<8x1xf32>
    %17 = vector.broadcast %16 : vector<8x1xf32> to vector<8x16xf32>
    %18 = arith.subf %14, %17 : vector<8x16xf32>
    %19 = math.exp %18 : vector<8x16xf32>
    %cst_12 = arith.constant dense<0.000000e+00> : vector<8xf32>
    %20 = vector.multi_reduction <add>, %19, %cst_12 [1] : vector<8x16xf32> to vector<8xf32>
    %21 = vector.shape_cast %20 : vector<8xf32> to vector<8x1xf32>
    %22 = arith.mulf %1, %19 : vector<8x16xf32>
    %cst_13 = arith.constant dense<0.000000e+00> : vector<8xf32>
    %23 = vector.multi_reduction <add>, %22, %cst_13 [1] : vector<8x16xf32> to vector<8xf32>
    %24 = vector.shape_cast %23 : vector<8xf32> to vector<8x1xf32>
    %25 = tpu.reciprocal %21 {approx = true} : vector<8x1xf32> -> vector<8x1xf32>
    %26 = arith.mulf %24, %25 : vector<8x1xf32>
    %c0_14 = arith.constant 0 : index
    %c0_15 = arith.constant 0 : index
    %27 = vector.load %arg6[%c0_14, %c0_15] : memref<8x1xf32, #tpu.memory_space<vmem>>, vector<8x1xf32>
    tpu.vector_store %arg6[%c0_14, %c0_15], %26 {strides = array<i32>} : memref<8x1xf32, #tpu.memory_space<vmem>>, vector<8x1xf32>,
    return
  }
  func.func @transform_0(%arg0: i32) -> (i32, i32) {
    %c0_i32 = arith.constant 0 : i32
    %c0_i32_0 = arith.constant 0 : i32
    return %arg0, %c0_i32 : i32, i32
  }
  func.func @transform_1(%arg0: i32) -> (i32, i32) {
    %c0_i32 = arith.constant 0 : i32
    %c0_i32_0 = arith.constant 0 : i32
    %c0_i32_1 = arith.constant 0 : i32
    return %c0_i32, %c0_i32_0 : i32, i32
  }
  func.func @transform_2(%arg0: i32) -> (i32, i32) {
    %c0_i32 = arith.constant 0 : i32
    %c0_i32_0 = arith.constant 0 : i32
    %c0_i32_1 = arith.constant 0 : i32
    return %c0_i32, %c0_i32_0 : i32, i32
  }
  func.func @transform_3(%arg0: i32) -> (i32, i32) {
    %c0_i32 = arith.constant 0 : i32
    %c0_i32_0 = arith.constant 0 : i32
    %c0_i32_1 = arith.constant 0 : i32
    return %c0_i32, %c0_i32_0 : i32, i32
  }
  func.func @transform_4(%arg0: i32) -> (i32, i32) {
    %c0_i32 = arith.constant 0 : i32
    %c0_i32_0 = arith.constant 0 : i32
    %c0_i32_1 = arith.constant 0 : i32
    return %c0_i32, %c0_i32_0 : i32, i32
  }
  func.func @transform_5(%arg0: i32) -> (i32, i32) {
    %c0_i32 = arith.constant 0 : i32
    %c0_i32_0 = arith.constant 0 : i32
    return %arg0, %c0_i32 : i32, i32
  }
}

</mosaic_0001>

<bundles_post_ra>
// kernel: tpu_custom_call.1
= control target key start
LH: loop header
LB: loop body
LE: loop exit
PB: predicated region body
PF: predicated region fallthrough
CT: control target
= control target key end

     0   :  { %v207_v0 = vmov 0.0   ;;  %vm208_vm0 = vmmov 0   ;;  %vm38_vm1 = vcmask 130048   ;;  %vm107_vm2 = vcmask 261120   ;;  %s264_s1 = inlined_call_operand.vmem [shape: bf16[16,32], index: 1, kind: input, shape index: {}]   ;;  %s265_s0 = inlined_call_operand.vmem [shape: bf16[8,16], index: 0, kind: input, shape index: {}]   ;;  %s266_s3 = inlined_call_operand.vmem [shape: bf16[32,16], index: 3, kind: input, shape index: {}]   ;;  %s267_s2 = inlined_call_operand.vmem [shape: f32[1,32], index: 2, kind: input, shape index: {}]   ;;  %s268_s4 = inlined_call_operand.vmem [shape: f32[1,16], index: 4, kind: input, shape index: {}]   ;;  %s269_s5 = inlined_call_operand.vmem [shape: f32[8,1], index: 5, kind: output, shape index: {}]  }
   0x1   :  { %184 = vmatprep.subr.bf16.mxu0 %v207_v0  ;;  %v200_v1 = vld [vmem:[%s264_s1] sm:$0xff]   ;;  %186 = vmatprep.mubr.msk.bf16.mxu0 %vm208_vm0, %v207_v0  ;;  %v202_v4 = vld [vmem:[%s266_s3 + $0x8] sm:$0xff]   ;;  %vm166_vm3 = vcmask 7168  }
   0x2   :  { %190 = vmatprep.subr.bf16.mxu1 %v207_v0  ;;  %194 = vmatprep.mubr.msk.bf16.mxu1 %vm208_vm0, %v207_v0  ;;  %v21_v2 = vld [vmem:[%s265_s0] sm:$0xf] }
   0x3   :  { %185 = vmatpush3.bf16.msra.mxu0 %v200_v1  ;;  %v201_v3 = vld [vmem:[%s266_s3] sm:$0xff]   ;;  %v22_v23 = vunpack.c.l.bf16 %v21_v2 }
   0x4   :  { %191 = vmatpush3.bf16.msra.mxu1 %v201_v3  ;;  %v172_v5 = vld [vmem:[%s267_s2] ss:$0 sm:$0xff] }
   0x5   :  { %192 = vmatprep.subr.bf16.mxu1 %v207_v0  ;;  %v175_v13 = vld [vmem:[%s268_s4] ss:$0 sm:$0xff] }
   0x6   :  { %187 = vmatmul.mubr.msk.bf16.vlgmr.msra.gmra.mrb[0].mxu0 %vm38_vm1, %v21_v2 }
   0x8   :  { %193 = vmatpush3.bf16.msra.mxu1 %v202_v4 }
  0xd9   :  { %v76_v6 = vpop.f32.mrb[0].mxu0 }
  0xda   :  { %v77_v7 = vadd.f32 %v172_v5, %v76_v6  ;;  %v188_v8 = vpop.f32.mrb[1].mxu0 }
  0xdb   :  { %v79_v9 = vpop.f32.mrb[2].mxu0 }
  0xdc   :  { %v82_v10 = vmax.f32 %v77_v7, 0.0  ;;  %v189_v11 = vpop.f32.mrb[3].mxu0 }
  0xde   :  { %v83_v12 = vpack.c.bf16 %v82_v10, %v82_v10 }
  0xe0   :  { %195 = vmatmul.mubr.msk.bf16.vlgmr.msra.gmra.mrb[0].mxu1 %vm107_vm2, %v83_v12 }
 0x1b3   :  { %v145_v14 = vpop.f32.mrb[0].mxu1 }
 0x1b4   :  { %v146_v15 = vadd.f32 %v175_v13, %v145_v14  ;;  %v196_v16 = vpop.f32.mrb[1].mxu1 }
 0x1b5   :  { %v148_v17 = vpop.f32.mrb[2].mxu1 }
 0x1b6   :  { %v197_v18 = vpop.f32.mrb[3].mxu1  ;;  %v151_v19 = vsel %vm38_vm1, %v146_v15, -inf }
 0x1b7   :  { %152 = vmax.xlane.f32.xlu0 %v151_v19 }
 0x244   :  { %v153_v20 = vpop.xlane.xlu0 %152 }
 0x245   :  { %v154_v21 = vsub.f32 %v146_v15, %v153_v20 }
 0x247   :  { %v155_v22 = vmul.f32 1.442695, %v154_v21 }
 0x249   :  { %203 = vpow2.f32 %v155_v22 }
 0x253   :  { %v204_v24 = vpop.eup %203 }
 0x254   :  { %v157_v25 = vsel %vm38_vm1, %v204_v24, 0.0  ;;  %v160_v26 = vmul.f32 %v204_v24, %v22_v23 }
 0x255   :  { %158 = vadd.xlane.f32.xlu0 %v157_v25 }
 0x256   :  { %v161_v27 = vsel %vm38_vm1, %v160_v26, 0.0 }
 0x257   :  { %162 = vadd.xlane.f32.xlu1 %v161_v27 }
 0x2e2   :  { %v159_v28 = vpop.xlane.xlu0 %158 }
 0x2e3   :  { %205 = vrcp.f32 %v159_v28 }
 0x2e4   :  { %v163_v30 = vpop.xlane.xlu1 %162 }
 0x2ed   :  { %v206_v29 = vpop.eup %205 }
 0x2ee   :  { %v165_v31 = vmul.f32 %v206_v29, %v163_v30 }
 0x2f0   :  { %167 = vst.msk [vmem:[%s269_s5] sm:$0xff] %vm166_vm3, %v165_v31 }

// kernel: tpu_custom_call.1
= control target key start
LH: loop header
LB: loop body
LE: loop exit
PB: predicated region body
PF: predicated region fallthrough
CT: control target
= control target key end

     0   :  { %v207_v0 = vmov 0.0   ;;  %vm208_vm0 = vmmov 0   ;;  %vm38_vm1 = vcmask 130048   ;;  %vm107_vm2 = vcmask 261120   ;;  %s264_s1 = inlined_call_operand.vmem [shape: bf16[16,32], index: 1, kind: input, shape index: {}]   ;;  %s265_s0 = inlined_call_operand.vmem [shape: bf16[8,16], index: 0, kind: input, shape index: {}]   ;;  %s266_s3 = inlined_call_operand.vmem [shape: bf16[32,16], index: 3, kind: input, shape index: {}]   ;;  %s267_s2 = inlined_call_operand.vmem [shape: f32[1,32], index: 2, kind: input, shape index: {}]   ;;  %s268_s4 = inlined_call_operand.vmem [shape: f32[1,16], index: 4, kind: input, shape index: {}]   ;;  %s269_s5 = inlined_call_operand.vmem [shape: f32[8,1], index: 5, kind: output, shape index: {}]  }
   0x1   :  { %184 = vmatprep.subr.bf16.mxu0 %v207_v0  ;;  %v200_v1 = vld [vmem:[%s264_s1] sm:$0xff]   ;;  %186 = vmatprep.mubr.msk.bf16.mxu0 %vm208_vm0, %v207_v0  ;;  %v202_v4 = vld [vmem:[%s266_s3 + $0x8] sm:$0xff]   ;;  %vm166_vm3 = vcmask 7168  }
   0x2   :  { %190 = vmatprep.subr.bf16.mxu1 %v207_v0  ;;  %194 = vmatprep.mubr.msk.bf16.mxu1 %vm208_vm0, %v207_v0  ;;  %v21_v2 = vld [vmem:[%s265_s0] sm:$0xf] }
   0x3   :  { %185 = vmatpush3.bf16.msra.mxu0 %v200_v1  ;;  %v201_v3 = vld [vmem:[%s266_s3] sm:$0xff]   ;;  %v22_v23 = vunpack.c.l.bf16 %v21_v2 }
   0x4   :  { %191 = vmatpush3.bf16.msra.mxu1 %v201_v3  ;;  %v172_v5 = vld [vmem:[%s267_s2] ss:$0 sm:$0xff] }
   0x5   :  { %192 = vmatprep.subr.bf16.mxu1 %v207_v0  ;;  %v175_v13 = vld [vmem:[%s268_s4] ss:$0 sm:$0xff] }
   0x6   :  { %187 = vmatmul.mubr.msk.bf16.vlgmr.msra.gmra.mrb[0].mxu0 %vm38_vm1, %v21_v2 }
   0x8   :  { %193 = vmatpush3.bf16.msra.mxu1 %v202_v4 }
  0xd9   :  { %v76_v6 = vpop.f32.mrb[0].mxu0 }
  0xda   :  { %v77_v7 = vadd.f32 %v172_v5, %v76_v6  ;;  %v188_v8 = vpop.f32.mrb[1].mxu0 }
  0xdb   :  { %v79_v9 = vpop.f32.mrb[2].mxu0 }
  0xdc   :  { %v82_v10 = vmax.f32 %v77_v7, 0.0  ;;  %v189_v11 = vpop.f32.mrb[3].mxu0 }
  0xde   :  { %v83_v12 = vpack.c.bf16 %v82_v10, %v82_v10 }
  0xe0   :  { %195 = vmatmul.mubr.msk.bf16.vlgmr.msra.gmra.mrb[0].mxu1 %vm107_vm2, %v83_v12 }
 0x1b3   :  { %v145_v14 = vpop.f32.mrb[0].mxu1 }
 0x1b4   :  { %v146_v15 = vadd.f32 %v175_v13, %v145_v14  ;;  %v196_v16 = vpop.f32.mrb[1].mxu1 }
 0x1b5   :  { %v148_v17 = vpop.f32.mrb[2].mxu1 }
 0x1b6   :  { %v197_v18 = vpop.f32.mrb[3].mxu1  ;;  %v151_v19 = vsel %vm38_vm1, %v146_v15, -inf }
 0x1b7   :  { %152 = vmax.xlane.f32.xlu0 %v151_v19 }
 0x244   :  { %v153_v20 = vpop.xlane.xlu0 %152 }
 0x245   :  { %v154_v21 = vsub.f32 %v146_v15, %v153_v20 }
 0x247   :  { %v155_v22 = vmul.f32 1.442695, %v154_v21 }
 0x249   :  { %203 = vpow2.f32 %v155_v22 }
 0x253   :  { %v204_v24 = vpop.eup %203 }
 0x254   :  { %v157_v25 = vsel %vm38_vm1, %v204_v24, 0.0  ;;  %v160_v26 = vmul.f32 %v204_v24, %v22_v23 }
 0x255   :  { %158 = vadd.xlane.f32.xlu0 %v157_v25 }
 0x256   :  { %v161_v27 = vsel %vm38_vm1, %v160_v26, 0.0 }
 0x257   :  { %162 = vadd.xlane.f32.xlu1 %v161_v27 }
 0x2e2   :  { %v159_v28 = vpop.xlane.xlu0 %158 }
 0x2e3   :  { %205 = vrcp.f32 %v159_v28 }
 0x2e4   :  { %v163_v30 = vpop.xlane.xlu1 %162 }
 0x2ed   :  { %v206_v29 = vpop.eup %205 }
 0x2ee   :  { %v165_v31 = vmul.f32 %v206_v29, %v163_v30 }
 0x2f0   :  { %167 = vst.msk [vmem:[%s269_s5] sm:$0xff] %vm166_vm3, %v165_v31 }

</bundles_post_ra>
